<compile_context>
chip_gen: v5e
topology: v5e:2x2
jax: 0.10.0
libtpu: 0.0.40
codegen_flags: <defaults>
</compile_context>

<pallas_src>
import functools

import jax
import jax.numpy as jnp
from jax import lax
from jax.experimental import pallas as pl
from jax.experimental.pallas import tpu as pltpu

_LANES = 128
_N_CHUNKS = 8                      # inner sub-chunks per grid block
_TARGET_BLOCK_BYTES = 4 << 20      # ~4 MiB of real input bytes per block per input
_ROW_ALIGN = 32 * _N_CHUNKS        # tm multiple of this => chunk multiple of 32


def _round_up(x, m):
    return ((x + m - 1) // m) * m


def _num_tensorcores():
    """Best-effort TensorCore count (2 on v7x, 1 on v5e/v6e); defaults to 1."""
    try:
        info = pltpu.get_tpu_info()
        for name in ("tensorcores_per_chip", "num_tensorcores",
                     "tensor_cores_per_chip", "num_cores_per_chip",
                     "num_cores", "cores_per_chip"):
            v = getattr(info, name, None)
            if v is None:
                continue
            v = int(v)
            if v >= 1:
                return v
    except Exception:
        pass
    return 1


def _sse_kernel(orig_ref, recon_ref, out_ref, *, tm, n_valid_rows, n_steps):
    # grid = (n_splits, n_steps); the (8, 128) output block stays resident
    # across the step axis and acts as the per-split accumulator.
    split = pl.program_id(0)
    step = pl.program_id(1)

    @pl.when(step == 0)
    def _init():
        out_ref[...] = jnp.zeros_like(out_ref)

    row0 = (split * n_steps + step) * tm        # global start row of this block
    chunk = tm // _N_CHUNKS                     # static, multiple of 32
    # Hoisted row-index pattern (do NOT regenerate per loop iteration).
    row_iota = lax.broadcasted_iota(jnp.int32, (chunk, _LANES), 0)

    def body(c, acc):
        r = pl.multiple_of(c * chunk, chunk)
        a = orig_ref[pl.ds(r, chunk), :].astype(jnp.float32)
        b = recon_ref[pl.ds(r, chunk), :].astype(jnp.float32)
        d = a - b
        sq = d * d
        # Mask rows at/after n_valid_rows (ragged last block / phantom blocks;
        # OOB-read garbage -> selected to 0, so NaN/Inf cannot leak in).
        limit = n_valid_rows - row0 - c * chunk
        sq = jnp.where(row_iota < limit, sq, 0.0)
        # Sublane-group partial reduce (chunk,128) -> (8,128): pure VPU adds,
        # keeps 1024 independent f32 partial sums for precision.
        return acc + jnp.sum(sq.reshape(chunk // 8, 8, _LANES), axis=0)

    acc = lax.fori_loop(0, _N_CHUNKS, body,
                        jnp.zeros((8, _LANES), jnp.float32))
    out_ref[...] += acc


def _sse_pallas(orig2d, recon2d, *, block_rows=None):
    """Sum of squared errors over (rows, 128) slabs via Pallas (HBM streaming)."""
    n_rows = orig2d.shape[0]
    itemsize = max(jnp.dtype(orig2d.dtype).itemsize,
                   jnp.dtype(recon2d.dtype).itemsize)

    if block_rows is None:
        tm = _TARGET_BLOCK_BYTES // (_LANES * itemsize)   # 8192 f32 / 16384 bf16
    else:
        tm = int(block_rows)
    tm = min(tm, _round_up(n_rows, _ROW_ALIGN))
    tm = max(_ROW_ALIGN, _round_up(tm, _ROW_ALIGN))

    total_blocks = pl.cdiv(n_rows, tm)

    # Split the row range across TensorCores only on chips that actually have
    # more than one (v7x); on v5e/v6e a split axis is just a serial loop.
    n_splits = 2 if (_num_tensorcores() >= 2 and total_blocks >= 4) else 1
    n_steps = pl.cdiv(total_blocks, n_splits)

    kernel = functools.partial(_sse_kernel, tm=tm, n_valid_rows=n_rows,
                               n_steps=n_steps)

    if n_splits > 1:
        dim_sems = (pltpu.CORE_PARALLEL, pltpu.ARBITRARY)
    else:
        dim_sems = ("arbitrary", "arbitrary")

    bytes_in = n_rows * _LANES * (jnp.dtype(orig2d.dtype).itemsize
                                  + jnp.dtype(recon2d.dtype).itemsize)
    cost = pl.CostEstimate(flops=4 * n_rows * _LANES, transcendentals=0,
                           bytes_accessed=int(bytes_in))

    in_map = lambda s, i: (s * n_steps + i, 0)

    partials = pl.pallas_call(
        kernel,
        out_shape=jax.ShapeDtypeStruct((n_splits * 8, _LANES), jnp.float32),
        grid=(n_splits, n_steps),
        in_specs=[pl.BlockSpec((tm, _LANES), in_map),
                  pl.BlockSpec((tm, _LANES), in_map)],
        out_specs=pl.BlockSpec((8, _LANES), lambda s, i: (s, 0)),
        compiler_params=pltpu.CompilerParams(
            dimension_semantics=dim_sems,
            vmem_limit_bytes=32 << 20),
        cost_estimate=cost,
    )(orig2d, recon2d)

    return jnp.sum(partials)


def joint_rd_loss(original, preprocessed, estimated_rate, reconstructed=None,
                  perceptual_loss=None, lambda_distortion=1.0, lambda_rate=0.1,
                  lambda_perception=0.01, block_rows=None):
    """JAX/Pallas equivalent of JointRDLoss.forward.

    `preprocessed` (the QAL features) is accepted for signature parity but is
    not used by the loss, exactly as in the PyTorch reference.
    """
    del preprocessed  # unused by the reference forward pass

    # PyTorch's fallback branches (no reconstruction / shape mismatch ->
    # constant 0.5 distortion) are host-side control flow; reproduced here.
    if reconstructed is None or original.shape != reconstructed.shape:
        distortion = jnp.float32(0.5)
    else:
        n_elems = int(original.size)
        if n_elems % _LANES == 0:
            # Zero-copy lane-dense view; f32 cast happens per-tile in VMEM so
            # bf16/fp16 frames stream half the HBM bytes.
            orig2d = jnp.ravel(original).reshape(-1, _LANES)
            recon2d = jnp.ravel(reconstructed).reshape(-1, _LANES)
            sse = _sse_pallas(orig2d, recon2d, block_rows=block_rows)
            distortion = sse / jnp.float32(n_elems)
        else:
            # TODO(synk): element counts not divisible by 128 would need a pad
            # or prefix-slice copy (or 1-D blocks) to reach the Pallas path;
            # use a single-pass fused XLA MSE for this rare case instead.
            distortion = jnp.mean(
                (original.astype(jnp.float32)
                 - reconstructed.astype(jnp.float32)) ** 2)

    # Tiny scalar / O(B*T) math: plain JAX in the wrapper.
    rate_mean = jnp.mean(jnp.asarray(estimated_rate, jnp.float32))

    total = lambda_distortion * distortion + lambda_rate * rate_mean
    if perceptual_loss is not None:
        perc = jnp.asarray(perceptual_loss, jnp.float32)
        total = total + lambda_perception * perc
    else:
        perc = jnp.float32(0.0)

    components = {
        "distortion_loss": distortion,
        "rate_loss": rate_mean,
        "perceptual_loss": perc,
        "total_loss": total,
    }
    return total, components


def _reference(original, reconstructed, estimated_rate, perceptual_loss,
               ld=1.0, lr=0.1, lp=0.01):
    if reconstructed is None or original.shape != reconstructed.shape:
        mse = jnp.float32(0.5)
    else:
        mse = jnp.mean((original.astype(jnp.float32)
                        - reconstructed.astype(jnp.float32)) ** 2)
    rate = jnp.mean(jnp.asarray(estimated_rate, jnp.float32))
    total = ld * mse + lr * rate
    if perceptual_loss is not None:
        total = total + lp * jnp.asarray(perceptual_loss, jnp.float32)
    return total, mse, rate


if __name__ == "__main__":
    key = jax.random.PRNGKey(0)
    ks = jax.random.split(key, 12)

    def check(total, comps, original, reconstructed, rate, perc,
              rtol=1e-5, atol=1e-6):
        ref_total, ref_mse, ref_rate = _reference(original, reconstructed,
                                                  rate, perc)
        assert jnp.allclose(total, ref_total, rtol=rtol, atol=atol), (total, ref_total)
        assert jnp.allclose(comps["distortion_loss"], ref_mse, rtol=rtol, atol=atol)
        assert jnp.allclose(comps["rate_loss"], ref_rate, rtol=rtol, atol=atol)

    # Case 1: small tidy frames -> single (row-masked) block through the kernel.
    orig1 = jax.random.normal(ks[0], (2, 4, 3, 16, 16), jnp.float32)
    recon1 = orig1 + 0.1 * jax.random.normal(ks[1], orig1.shape, jnp.float32)
    rate1 = jax.nn.softplus(jax.random.normal(ks[2], (2, 4), jnp.float32))
    pre1 = jax.random.normal(ks[3], (2, 8, 4, 4, 4), jnp.float32)
    total1, comps1 = joint_rd_loss(orig1, pre1, rate1, reconstructed=recon1,
                                   perceptual_loss=jnp.float32(0.03))
    jax.block_until_ready(total1)
    check(total1, comps1, orig1, recon1, rate1, jnp.float32(0.03))

    # Case 2: multi-step grid with a ragged last block (480 rows, 256-row blocks).
    orig2 = jax.random.normal(ks[4], (2, 3, 4, 40, 64), jnp.float32)
    recon2 = orig2 + 0.05 * jax.random.normal(ks[5], orig2.shape, jnp.float32)
    rate2 = jax.nn.softplus(jax.random.normal(ks[6], (2, 3), jnp.float32))
    total2, comps2 = joint_rd_loss(orig2, None, rate2, reconstructed=recon2,
                                   perceptual_loss=None, block_rows=256)
    jax.block_until_ready(total2)
    check(total2, comps2, orig2, recon2, rate2, None)

    # Case 3: bf16 frames (half the HBM bytes; f32 cast in VMEM), default tiling.
    orig3 = jax.random.normal(ks[7], (2, 4, 3, 64, 96), jnp.bfloat16)
    recon3 = (orig3.astype(jnp.float32)
              + 0.1 * jax.random.normal(ks[8], orig3.shape, jnp.float32)
              ).astype(jnp.bfloat16)
    rate3 = jax.nn.softplus(jax.random.normal(ks[9], (2, 4), jnp.float32))
    total3, comps3 = joint_rd_loss(orig3, None, rate3, reconstructed=recon3,
                                   perceptual_loss=jnp.float32(0.1))
    jax.block_until_ready(total3)
    check(total3, comps3, orig3, recon3, rate3, jnp.float32(0.1),
          rtol=1e-3, atol=1e-5)

    # Case 4: element count not divisible by 128 -> fused-XLA fallback path.
    orig4 = jax.random.normal(ks[10], (2, 3, 3, 20, 18), jnp.float32)
    recon4 = orig4 + 0.05 * jax.random.normal(ks[11], orig4.shape, jnp.float32)
    rate4 = jax.nn.softplus(jax.random.normal(ks[2], (2, 3), jnp.float32))
    total4, comps4 = joint_rd_loss(orig4, None, rate4, reconstructed=recon4,
                                   perceptual_loss=None)
    jax.block_until_ready(total4)
    check(total4, comps4, orig4, recon4, rate4, None)

    # Case 5: PyTorch fallback (no reconstruction -> constant 0.5 distortion).
    total5, comps5 = joint_rd_loss(orig1, pre1, rate1, reconstructed=None,
                                   perceptual_loss=None)
    jax.block_until_ready(total5)
    check(total5, comps5, orig1, None, rate1, None)

    print("KERNEL_OK")
</pallas_src>

<mosaic_0001>
module attributes {stable_mosaic.version = 11 : i64} {
  func.func @_sse_kernel(%arg0: i32, %arg1: i32, %arg2: memref<256x128xf32, #tpu.memory_space<vmem>>, %arg3: memref<256x128xf32, #tpu.memory_space<vmem>>, %arg4: memref<8x128xf32, #tpu.memory_space<vmem>>) attributes {dimension_semantics = [#tpu.dimension_semantics<arbitrary>, #tpu.dimension_semantics<arbitrary>], iteration_bounds = array<i64: 1, 1>, scalar_prefetch = 0 : i64, scratch_operands = 0 : i64, tpu.core_type = #tpu.core_type<tc>, window_params = [{transform_indices = @transform_0, window_bounds = array<i64: 256, 128>}, {transform_indices = @transform_1, window_bounds = array<i64: 256, 128>}, {transform_indices = @transform_2, window_bounds = array<i64: 8, 128>}]} {
    %c0_i32 = arith.constant 0 : i32
    %0 = arith.cmpi eq, %arg1, %c0_i32 : i32
    %1 = arith.extui %0 : i1 to i32
    %c0_i32_0 = arith.constant 0 : i32
    %2 = arith.cmpi ne, %1, %c0_i32_0 : i32
    scf.if %2 {
      %cst_7 = arith.constant 0.000000e+00 : f32
      %13 = vector.broadcast %cst_7 : f32 to vector<8x128xf32>
      %c0_8 = arith.constant 0 : index
      %c0_9 = arith.constant 0 : index
      %14 = vector.load %arg4[%c0_8, %c0_9] : memref<8x128xf32, #tpu.memory_space<vmem>>, vector<8x128xf32>
      tpu.vector_store %arg4[%c0_8, %c0_9], %13 {strides = array<i32>} : memref<8x128xf32, #tpu.memory_space<vmem>>, vector<8x128xf32>,
    } else {
    }
    %c1_i32 = arith.constant 1 : i32
    %3 = arith.muli %arg0, %c1_i32 : i32
    %4 = arith.addi %3, %arg1 : i32
    %c256_i32 = arith.constant 256 : i32
    %5 = arith.muli %4, %c256_i32 : i32
    %6 = tpu.iota {dimensions = array<i32: 0>} : vector<32x128xi32>
    %cst = arith.constant 0.000000e+00 : f32
    %7 = vector.broadcast %cst : f32 to vector<8x128xf32>
    %c0_i32_1 = arith.constant 0 : i32
    %c8_i32 = arith.constant 8 : i32
    %8 = arith.addi %c0_i32_1, %c8_i32 : i32
    %c1_i32_2 = arith.constant 1 : i32
    %9 = scf.for %arg5 = %c0_i32_1 to %8 step %c1_i32_2 iter_args(%arg6 = %7) -> (vector<8x128xf32>)  : i32 {
      %c32_i32 = arith.constant 32 : i32
      %13 = arith.muli %arg5, %c32_i32 : i32
      %14 = tpu.assume_multiple %13, 32 : i32
      %15 = arith.index_cast %14 : i32 to index
      %c0_7 = arith.constant 0 : index
      %16 = vector.load %arg2[%15, %c0_7] : memref<256x128xf32, #tpu.memory_space<vmem>>, vector<32x128xf32>
      %17 = arith.index_cast %14 : i32 to index
      %c0_8 = arith.constant 0 : index
      %18 = vector.load %arg3[%17, %c0_8] : memref<256x128xf32, #tpu.memory_space<vmem>>, vector<32x128xf32>
      %19 = arith.subf %16, %18 : vector<32x128xf32>
      %20 = arith.mulf %19, %19 : vector<32x128xf32>
      %c48_i32 = arith.constant 48 : i32
      %21 = arith.subi %c48_i32, %5 : i32
      %c32_i32_9 = arith.constant 32 : i32
      %22 = arith.muli %arg5, %c32_i32_9 : i32
      %23 = arith.subi %21, %22 : i32
      %24 = vector.broadcast %23 : i32 to vector<32x128xi32>
      %25 = arith.cmpi slt, %6, %24 : vector<32x128xi32>
      %cst_10 = arith.constant 0.000000e+00 : f32
      %26 = vector.broadcast %cst_10 : f32 to vector<32x128xf32>
      %27 = arith.select %25, %20, %26 : vector<32x128xi1>, vector<32x128xf32>
      %28 = vector.shape_cast %27 : vector<32x128xf32> to vector<4x8x128xf32>
      %cst_11 = arith.constant dense<0.000000e+00> : vector<8x128xf32>
      %29 = vector.multi_reduction <add>, %28, %cst_11 [0] : vector<4x8x128xf32> to vector<8x128xf32>
      %30 = arith.addf %arg6, %29 : vector<8x128xf32>
      scf.yield %30 : vector<8x128xf32>
    }
    %c8_i32_3 = arith.constant 8 : i32
    %c0 = arith.constant 0 : index
    %c0_4 = arith.constant 0 : index
    %10 = vector.load %arg4[%c0, %c0_4] : memref<8x128xf32, #tpu.memory_space<vmem>>, vector<8x128xf32>
    %11 = arith.addf %10, %9 : vector<8x128xf32>
    %c0_5 = arith.constant 0 : index
    %c0_6 = arith.constant 0 : index
    %12 = vector.load %arg4[%c0_5, %c0_6] : memref<8x128xf32, #tpu.memory_space<vmem>>, vector<8x128xf32>
    tpu.vector_store %arg4[%c0_5, %c0_6], %11 {strides = array<i32>} : memref<8x128xf32, #tpu.memory_space<vmem>>, vector<8x128xf32>,
    return
  }
  func.func @transform_0(%arg0: i32, %arg1: i32) -> (i32, i32) {
    %c1_i32 = arith.constant 1 : i32
    %0 = arith.muli %arg0, %c1_i32 : i32
    %1 = arith.addi %0, %arg1 : i32
    %c0_i32 = arith.constant 0 : i32
    %c0_i32_0 = arith.constant 0 : i32
    return %1, %c0_i32 : i32, i32
  }
  func.func @transform_1(%arg0: i32, %arg1: i32) -> (i32, i32) {
    %c1_i32 = arith.constant 1 : i32
    %0 = arith.muli %arg0, %c1_i32 : i32
    %1 = arith.addi %0, %arg1 : i32
    %c0_i32 = arith.constant 0 : i32
    %c0_i32_0 = arith.constant 0 : i32
    return %1, %c0_i32 : i32, i32
  }
  func.func @transform_2(%arg0: i32, %arg1: i32) -> (i32, i32) {
    %c0_i32 = arith.constant 0 : i32
    %c0_i32_0 = arith.constant 0 : i32
    return %arg0, %c0_i32 : i32, i32
  }
}

</mosaic_0001>

<bundles_post_ra>
// kernel: tpu_custom_call.1
= control target key start
LH: loop header
LB: loop body
LE: loop exit
PB: predicated region body
PF: predicated region fallthrough
CT: control target
= control target key end

     0   :  { %7 = vsyncpa [#allocation3], 0  ;;  %s312_s0 = inlined_call_operand.hbm [shape: f32[48,128], index: 0, kind: input, shape index: {}]   ;;  %s313_s1 = inlined_call_operand.hbm [shape: f32[48,128], index: 1, kind: input, shape index: {}]   ;;  %s314_s2 = inlined_call_operand.hbm [shape: f32[8,128], index: 2, kind: output, shape index: {}]  }
   0x1   :  { %8 = vsyncpa [#allocation6], 0 }
   0x2   :  { %9 = vsyncpa [#allocation4], 0 }
   0x3   :  { %18 = vsyncadd [#allocation3], 3328  ;;  %s23_s11 = sshll.u32 %s312_s0, 4  ;;  %s273_s12 = smov [#allocation2]   ;;  %s24_s11 = int_to_ptr.hbm [resolvable:$true] %s23_s11 }
   0x4   :  { %s25_s13 = sshll.u32 %s273_s12, 4  ;;  %s274_s14 = smov 128   ;;  %s26_s13 = int_to_ptr.vmem [resolvable:$true] %s25_s13 }
   0x5   :  { %s275_s15 = smov 8  }
   0x6   :  { %31 = dma.hbm_to_vmem [thread:$0]  %s24_s11, 768, %s26_s13, [#allocation3], %s274_s14, %s274_s14, %s275_s15  }
   0x7   :  { %40 = vsyncadd [#allocation6], 3328  ;;  %s45_s18 = sshll.u32 %s313_s1, 4  ;;  %s276_s19 = smov [#allocation5]   ;;  %s46_s18 = int_to_ptr.hbm [resolvable:$true] %s45_s18 }
   0x8   :  { %s47_s20 = sshll.u32 %s276_s19, 4  ;;  %s48_s20 = int_to_ptr.vmem [resolvable:$true] %s47_s20 }
   0x9   :  { %53 = dma.hbm_to_vmem [thread:$0]  %s46_s18, 768, %s48_s20, [#allocation6], %s274_s14, %s274_s14, %s275_s15  }
   0xa   :  { %259 = dma.done.wait [#allocation3], 4096  }
   0xb   :  { %260 = vsyncadd [#allocation3], 4294963200 }
   0xc   :  { %261 = dma.done.wait [#allocation6], 4096  }
   0xd   :  { %262 = vsyncadd [#allocation6], 4294963200  ;;  %v77_v0 = vlaneseq  ;;  %v277_v1 = vmov 0.0   ;;  %v265_v6 = vmov 0.0   ;;  %s300_s0 = smov 0  }
   0xe   :  { %74 = vst [vmem:[#allocation7] sm:$0xff] %v277_v1 }
   0xf   :  { %v78_v2 = vshrl.u32 %v77_v0, 7 }
  0x11   :  { %v79_v3 = vadd.s32 8, %v78_v2  ;;  %v80_v4 = vadd.s32 16, %v78_v2  ;;  %v81_v5 = vadd.s32 24, %v78_v2 }
  0x12 LB: > { %s156_s1 = sshll.u32 %s271_s0, 5  ;;  %s87_s0 = sadd.s32 1, %s271_s0   ;;  %s271_s0 = sphi %s300_s0, %s87_s0   ;;  %v267_v6 = vphi %v265_v6, %v266_v6  }
  0x13   : > { %s90_s21 = scalar_lea.vmem [#allocation2], %s156_s1  ;;  %s109_s22 = ssub.s32 48, %s156_s1 }
  0x14   : > { %v91_v7 = vld [vmem:[%s90_s21] sm:$0xff]  ;;  %v92_v8 = vld [vmem:[%s90_s21 + $0x8] sm:$0xff]  ;;  %v93_v9 = vld [vmem:[%s90_s21 + $0x10] sm:$0xff]  ;;  %s95_s23 = scalar_lea.vmem [#allocation5], %s156_s1  ;;  %v110_v13 = vstv %s109_s22  ;;  %p84_p0 = scmp.ge.s32.totalorder %s87_s0, 8  }
  0x15   : > { %v94_v10 = vld [vmem:[%s90_s21 + $0x18] sm:$0xff]  ;;  %v96_v11 = vld [vmem:[%s95_s23] sm:$0xff]  ;;  %v97_v12 = vld [vmem:[%s95_s23 + $0x8] sm:$0xff]  ;;  %vm111_vm0 = vcmp.lt.s32.totalorder %v78_v2, %v110_v13  ;;  %vm112_vm1 = vcmp.lt.s32.totalorder %v79_v3, %v110_v13  ;;  %vm113_vm2 = vcmp.lt.s32.totalorder %v80_v4, %v110_v13  ;;  %vm114_vm3 = vcmp.lt.s32.totalorder %v81_v5, %v110_v13  ;;  %s133_s26 = sshll.u32 (%p84_p0), %s314_s2, 4  ;;  %s278_s27 = smov (%p84_p0), [#allocation7]   ;;  %s134_s26 = int_to_ptr.hbm [resolvable:$true] %s133_s26 }
  0x16   : > { %v98_v14 = vld [vmem:[%s95_s23 + $0x10] sm:$0xff]  ;;  %v99_v15 = vld [vmem:[%s95_s23 + $0x18] sm:$0xff]  ;;  %v100_v16 = vsub.f32 %v91_v7, %v96_v11  ;;  %v101_v17 = vsub.f32 %v92_v8, %v97_v12  ;;  %v123_v32 = vld [vmem:[#allocation7] sm:$0xff] (%p84_p0)  ;;  %s131_s28 = sshll.u32 (%p84_p0), %s278_s27, 4  ;;  %s132_s28 = int_to_ptr.vmem [resolvable:$true] %s131_s28 }
  0x17   : > { %v102_v18 = vsub.f32 %v93_v9, %v98_v14  ;;  %v103_v19 = vsub.f32 %v94_v10, %v99_v15 }
  0x18   : > { %v104_v20 = vmul.f32 %v100_v16, %v100_v16  ;;  %v105_v21 = vmul.f32 %v101_v17, %v101_v17 }
  0x19   : > { %v106_v22 = vmul.f32 %v102_v18, %v102_v18  ;;  %v107_v23 = vmul.f32 %v103_v19, %v103_v19 }
  0x1a   : > { %v115_v24 = vsel %vm111_vm0, %v104_v20, 0.0  ;;  %v116_v25 = vsel %vm112_vm1, %v105_v21, 0.0 }
  0x1b   : > { %v117_v26 = vsel %vm113_vm2, %v106_v22, 0.0  ;;  %v119_v27 = vadd.f32 %v116_v25, %v115_v24  ;;  %v118_v28 = vsel %vm114_vm3, %v107_v23, 0.0 }
  0x1d   : > { %v120_v29 = vadd.f32 %v119_v27, %v117_v26 }
  0x1f   : > { %v121_v30 = vadd.f32 %v120_v29, %v118_v28  ;;  %86 = sbr.rel (!%p84_p0) target bundleno = 18 (0x12), region = 51 }
  0x21   : > { %v122_v31 = vadd.f32 %v267_v6, %v121_v30  }
  0x23   : > { %v266_v6 = vmov %v122_v31   ;;  %v124_v33 = vadd.f32 (%p84_p0), %v123_v32, %v122_v31 }
  0x25   :  { %125 = vst [vmem:[#allocation7] sm:$0xff] %v124_v33 }
  0x26   :  { %136 = dma.vmem_to_hbm [thread:$0]  %s132_s28, 128, %s134_s26, [#allocation4]  }
  0x27   :  { %263 = dma.done.wait [#allocation4], 128  }
  0x28   :  { %264 = vsyncadd [#allocation4], 4294967168 }
  0x29   :  { %141 = vsyncpa [#allocation3], 1 }
  0x2a   :  { %142 = vsyncpa [#allocation6], 1 }
  0x2b   :  { %143 = vsyncpa [#allocation4], 1 }

</bundles_post_ra>
